<compile_context>
chip_gen: v6e
topology: v6e:2x2x1
jax: 0.10.0
libtpu: 0.0.40
codegen_flags: <defaults>
</compile_context>

<pallas_src>
import functools

import jax
import jax.numpy as jnp
from jax.experimental import pallas as pl
from jax.experimental.pallas import tpu as pltpu


# ----------------------------------------------------------------------------
# Fused kernel.
#   dx_ref   : (block_b, CHW_p)  bf16   pre-diffed, flattened images (x1 - x2)
#   wbb_ref  : (CHW_p, F_p)      bf16   pooling folded in (rows = w_bb / HW)
#   wfc_ref  : (F_p, HID_p)      bf16
#   wfc2_ref : (HID_p, OUT_p)    bf16   already scaled by 0.5 (the averaging)
#   bias_ref : (2, NMAX)         f32    row 0 = b_fc, row 1 = b_fc2 (padded)
#   o_ref    : (block_b, OUT_p)  f32
# Math (exact rewrite of the module head, given a linear backbone stand-in):
#   d  = pool(x1 - x2) @ w_bb                      (b_bb cancels)
#   s  = d @ w_fc
#   h  = relu(s + b_fc) + relu(b_fc - s)           (== fc(x1-x2)+ / fc(x2-x1)+)
#   y  = h @ (0.5 * w_fc2) + b_fc2
# ----------------------------------------------------------------------------
def fused_kernel(dx_ref, wbb_ref, wfc_ref, wfc2_ref, bias_ref, o_ref,
                 *, hid_p, out_p):
    # Backbone stand-in: pooling is folded into the (K = C*H*W) matmul.
    d = jnp.dot(dx_ref[...], wbb_ref[...],
                preferred_element_type=jnp.float32)            # (TB, F_p) f32

    # Head: single fc matmul, both ReLU branches derived from it.
    s = jnp.dot(d.astype(jnp.bfloat16), wfc_ref[...],
                preferred_element_type=jnp.float32)            # (TB, HID_p) f32

    bias = bias_ref[...]                                       # (2, NMAX) f32
    bfc = bias[0:1, :hid_p]
    bfc2 = bias[1:2, :out_p]

    h1 = jnp.maximum(s + bfc, 0.0)
    h2 = jnp.maximum(bfc - s, 0.0)
    h = (h1 + h2).astype(jnp.bfloat16)                         # 0.5 is in w_fc2

    out = jnp.dot(h, wfc2_ref[...],
                  preferred_element_type=jnp.float32) + bfc2
    o_ref[...] = out                                           # lane-dense store


def _round_up(x, m):
    return ((x + m - 1) // m) * m


# ----------------------------------------------------------------------------
# Wrapper: pre-diff the images, flatten spatial into the contraction dim,
# zero-pad every matmul dim to 128 lanes, pick a batch tile, launch one fused
# kernel, slice the result.  Zero padding is exact (padded rows/cols are zero).
# ----------------------------------------------------------------------------
def turtle_diff_pool_forward(x1, x2, params, *, block_b=256):
    B, C, H, W = x1.shape
    HW = H * W
    CHW = C * HW
    F = params["w_bb"].shape[1]
    HID = params["w_fc"].shape[1]
    OUT = params["w_fc2"].shape[1]

    LANE = 128
    SUB = 8
    CHW_p = _round_up(CHW, LANE)
    F_p = _round_up(F, LANE)
    HID_p = _round_up(HID, LANE)
    OUT_p = _round_up(OUT, LANE)
    NMAX = max(HID_p, OUT_p)

    # Batch tile: multiple of 8 sublanes, no larger than the padded batch, and
    # (when the batch is big enough) >= 2 grid steps so v7x's two TensorCores
    # both get work under dimension_semantics=("parallel",).
    block_b = _round_up(max(block_b, SUB), SUB)
    B8 = _round_up(B, SUB)
    block_b = min(block_b, B8)
    if B8 // block_b < 2 and B8 >= 2 * SUB:
        block_b = _round_up(B8 // 2, SUB)
    B_p = _round_up(B, block_b)
    grid = (B_p // block_b,)

    # --- input prep (all exact zero-padding; bf16 only on MXU operands) -----
    # Linear stand-in backbone => diff the images BEFORE the backbone matmul.
    dx = (x1 - x2).reshape(B, CHW)
    dx = jnp.pad(dx, ((0, B_p - B), (0, CHW_p - CHW))).astype(jnp.bfloat16)

    # Fold the GAP (mean over HW) into the backbone weight: row c*HW+hw = w_bb[c]/HW.
    w_bb_exp = jnp.repeat(params["w_bb"] / HW, HW, axis=0)               # (CHW, F)
    w_bb_exp = jnp.pad(w_bb_exp,
                       ((0, CHW_p - CHW), (0, F_p - F))).astype(jnp.bfloat16)
    # b_bb cancels in f1 - f2 and is not needed in the kernel.

    wfc = jnp.pad(params["w_fc"],
                  ((0, F_p - F), (0, HID_p - HID))).astype(jnp.bfloat16)
    # Fold the (h1 + h2) / 2 averaging into w_fc2 (weight only, not the bias).
    wfc2 = jnp.pad(params["w_fc2"] * 0.5,
                   ((0, HID_p - HID), (0, OUT_p - OUT))).astype(jnp.bfloat16)

    # Pack the two remaining biases into one block (single DMA stream).
    bias_pack = jnp.zeros((2, NMAX), jnp.float32)
    bias_pack = bias_pack.at[0, :HID].set(params["b_fc"].reshape(-1))
    bias_pack = bias_pack.at[1, :OUT].set(params["b_fc2"].reshape(-1))

    # --- VMEM budget (explicit; double-buffered inputs + output), capped so
    # it is safe on v7x's 64 MiB physical VMEM as well as v5e/v6e. -----------
    est = (2 * block_b * CHW_p * 2
           + 2 * CHW_p * F_p * 2
           + 2 * F_p * HID_p * 2
           + 2 * HID_p * OUT_p * 2
           + 2 * SUB * NMAX * 4
           + 2 * block_b * OUT_p * 4)
    vmem_limit = int(min(max(4 * est, 32 * 1024 * 1024), 48 * 1024 * 1024))

    def const_spec(shape):
        return pl.BlockSpec(shape, lambda b: (0,) * len(shape))

    out = pl.pallas_call(
        functools.partial(fused_kernel, hid_p=HID_p, out_p=OUT_p),
        out_shape=jax.ShapeDtypeStruct((B_p, OUT_p), jnp.float32),
        grid_spec=pltpu.PrefetchScalarGridSpec(
            num_scalar_prefetch=0,
            grid=grid,
            in_specs=[
                pl.BlockSpec((block_b, CHW_p), lambda b: (b, 0)),  # dx (bf16)
                const_spec((CHW_p, F_p)),     # w_bb (pooling folded in)
                const_spec((F_p, HID_p)),     # w_fc
                const_spec((HID_p, OUT_p)),   # w_fc2 (0.5 folded in)
                const_spec((2, NMAX)),        # packed biases (f32)
            ],
            out_specs=pl.BlockSpec((block_b, OUT_p), lambda b: (b, 0)),
        ),
        compiler_params=pltpu.CompilerParams(
            dimension_semantics=("parallel",),
            vmem_limit_bytes=vmem_limit),
    )(dx, w_bb_exp, wfc, wfc2, bias_pack)

    return out[:B, :OUT]


# ----------------------------------------------------------------------------
# Pure-JAX reference (f32, highest matmul precision) for sanity checking.
# ----------------------------------------------------------------------------
def reference_forward(x1, x2, params):
    hp = jax.lax.Precision.HIGHEST

    def bb(x):
        return jnp.dot(jnp.mean(x, axis=(2, 3)), params["w_bb"],
                       precision=hp) + params["b_bb"]

    f1, f2 = bb(x1), bb(x2)
    d = f1 - f2
    h1 = jax.nn.relu(jnp.dot(d, params["w_fc"], precision=hp) + params["b_fc"])
    h2 = jax.nn.relu(jnp.dot(-d, params["w_fc"], precision=hp) + params["b_fc"])
    h = (h1 + h2) / 2.0
    return jnp.dot(h, params["w_fc2"], precision=hp) + params["b_fc2"]


if __name__ == "__main__":
    # Small shapes consistent with the module's forward:
    #   two images (B, C, H, W); backbone features F; hidden H; 2 logits.
    B, C, Hsp, Wsp = 2, 4, 16, 16
    NUM_FEATURES = 32   # stand-in for backbone.num_features
    HIDDEN = 32         # stand-in for hidden=100 (kept small)

    key = jax.random.PRNGKey(0)
    k1, k2, k3, k4, k5, k6 = jax.random.split(key, 6)

    x1 = jax.random.normal(k1, (B, C, Hsp, Wsp), dtype=jnp.float32)
    x2 = jax.random.normal(k2, (B, C, Hsp, Wsp), dtype=jnp.float32)

    params = {
        "w_bb": jax.random.normal(k3, (C, NUM_FEATURES), dtype=jnp.float32) * 0.1,
        "b_bb": jnp.zeros((1, NUM_FEATURES), dtype=jnp.float32),
        "w_fc": jax.random.normal(k4, (NUM_FEATURES, HIDDEN), dtype=jnp.float32) * 0.1,
        "b_fc": jax.random.normal(k5, (1, HIDDEN), dtype=jnp.float32) * 0.01,
        "w_fc2": jax.random.normal(k6, (HIDDEN, 2), dtype=jnp.float32) * 0.1,
        "b_fc2": jnp.zeros((1, 2), dtype=jnp.float32),
    }

    out = turtle_diff_pool_forward(x1, x2, params)
    out = jax.block_until_ready(out)

    ref = reference_forward(x1, x2, params)
    assert out.shape == (B, 2), out.shape
    # bf16 MXU operands vs f32-HIGHEST reference => loosened tolerance.
    assert jnp.allclose(out, ref, atol=5e-3, rtol=2e-2), (out, ref)

    print("KERNEL_OK")
</pallas_src>

<mosaic_0001>
module attributes {stable_mosaic.version = 11 : i64} {
  func.func @fused_kernel(%arg0: i32, %arg1: memref<8x1024xbf16, #tpu.memory_space<vmem>>, %arg2: memref<1024x128xbf16, #tpu.memory_space<vmem>>, %arg3: memref<128x128xbf16, #tpu.memory_space<vmem>>, %arg4: memref<128x128xbf16, #tpu.memory_space<vmem>>, %arg5: memref<2x128xf32, #tpu.memory_space<vmem>>, %arg6: memref<8x128xf32, #tpu.memory_space<vmem>>) attributes {dimension_semantics = [#tpu.dimension_semantics<parallel>], iteration_bounds = array<i64: 1>, scalar_prefetch = 0 : i64, scratch_operands = 0 : i64, tpu.core_type = #tpu.core_type<tc>, window_params = [{transform_indices = @transform_0, window_bounds = array<i64: 8, 1024>}, {pipeline_mode = #tpu.pipeline_mode<synchronous>, transform_indices = @transform_1, window_bounds = array<i64: 1024, 128>}, {pipeline_mode = #tpu.pipeline_mode<synchronous>, transform_indices = @transform_2, window_bounds = array<i64: 128, 128>}, {pipeline_mode = #tpu.pipeline_mode<synchronous>, transform_indices = @transform_3, window_bounds = array<i64: 128, 128>}, {pipeline_mode = #tpu.pipeline_mode<synchronous>, transform_indices = @transform_4, window_bounds = array<i64: 2, 128>}, {transform_indices = @transform_5, window_bounds = array<i64: 8, 128>}]} {
    %c0 = arith.constant 0 : index
    %c0_0 = arith.constant 0 : index
    %0 = vector.load %arg1[%c0, %c0_0] : memref<8x1024xbf16, #tpu.memory_space<vmem>>, vector<8x1024xbf16>
    %c0_1 = arith.constant 0 : index
    %c0_2 = arith.constant 0 : index
    %1 = vector.load %arg2[%c0_1, %c0_2] : memref<1024x128xbf16, #tpu.memory_space<vmem>>, vector<1024x128xbf16>
    %cst = arith.constant dense<0.000000e+00> : vector<8x128xf32>
    %2 = tpu.matmul %0, %1, %cst {dimension_numbers = #tpu.dot_dimension_numbers<[1], [0], [0], [1], [0, 0, 1, 1], [], []>} : vector<8x1024xbf16>, vector<1024x128xbf16>, vector<8x128xf32> -> vector<8x128xf32>
    %3 = arith.truncf %2 : vector<8x128xf32> to vector<8x128xbf16>
    %c0_3 = arith.constant 0 : index
    %c0_4 = arith.constant 0 : index
    %4 = vector.load %arg3[%c0_3, %c0_4] : memref<128x128xbf16, #tpu.memory_space<vmem>>, vector<128x128xbf16>
    %cst_5 = arith.constant dense<0.000000e+00> : vector<8x128xf32>
    %5 = tpu.matmul %3, %4, %cst_5 {dimension_numbers = #tpu.dot_dimension_numbers<[1], [0], [0], [1], [0, 0, 1, 1], [], []>} : vector<8x128xbf16>, vector<128x128xbf16>, vector<8x128xf32> -> vector<8x128xf32>
    %c0_6 = arith.constant 0 : index
    %c0_7 = arith.constant 0 : index
    %6 = vector.load %arg5[%c0_6, %c0_7] : memref<2x128xf32, #tpu.memory_space<vmem>>, vector<2x128xf32>
    %7 = vector.extract_strided_slice %6 {offsets = [0, 0], sizes = [1, 128], strides = [1, 1]} : vector<2x128xf32> to vector<1x128xf32>
    %8 = vector.extract_strided_slice %6 {offsets = [1, 0], sizes = [1, 128], strides = [1, 1]} : vector<2x128xf32> to vector<1x128xf32>
    %9 = vector.broadcast %7 : vector<1x128xf32> to vector<8x128xf32>
    %10 = arith.addf %5, %9 : vector<8x128xf32>
    %cst_8 = arith.constant 0.000000e+00 : f32
    %11 = vector.broadcast %cst_8 : f32 to vector<8x128xf32>
    %12 = arith.maximumf %10, %11 : vector<8x128xf32>
    %13 = vector.broadcast %7 : vector<1x128xf32> to vector<8x128xf32>
    %14 = arith.subf %13, %5 : vector<8x128xf32>
    %cst_9 = arith.constant 0.000000e+00 : f32
    %15 = vector.broadcast %cst_9 : f32 to vector<8x128xf32>
    %16 = arith.maximumf %14, %15 : vector<8x128xf32>
    %17 = arith.addf %12, %16 : vector<8x128xf32>
    %18 = arith.truncf %17 : vector<8x128xf32> to vector<8x128xbf16>
    %c0_10 = arith.constant 0 : index
    %c0_11 = arith.constant 0 : index
    %19 = vector.load %arg4[%c0_10, %c0_11] : memref<128x128xbf16, #tpu.memory_space<vmem>>, vector<128x128xbf16>
    %cst_12 = arith.constant dense<0.000000e+00> : vector<8x128xf32>
    %20 = tpu.matmul %18, %19, %cst_12 {dimension_numbers = #tpu.dot_dimension_numbers<[1], [0], [0], [1], [0, 0, 1, 1], [], []>} : vector<8x128xbf16>, vector<128x128xbf16>, vector<8x128xf32> -> vector<8x128xf32>
    %21 = vector.broadcast %8 : vector<1x128xf32> to vector<8x128xf32>
    %22 = arith.addf %20, %21 : vector<8x128xf32>
    %c0_13 = arith.constant 0 : index
    %c0_14 = arith.constant 0 : index
    %23 = vector.load %arg6[%c0_13, %c0_14] : memref<8x128xf32, #tpu.memory_space<vmem>>, vector<8x128xf32>
    tpu.vector_store %arg6[%c0_13, %c0_14], %22 {strides = array<i32>} : memref<8x128xf32, #tpu.memory_space<vmem>>, vector<8x128xf32>,
    return
  }
  func.func @transform_0(%arg0: i32) -> (i32, i32) {
    %c0_i32 = arith.constant 0 : i32
    %c0_i32_0 = arith.constant 0 : i32
    return %arg0, %c0_i32 : i32, i32
  }
  func.func @transform_1(%arg0: i32) -> (i32, i32) {
    %c0_i32 = arith.constant 0 : i32
    %c0_i32_0 = arith.constant 0 : i32
    %c0_i32_1 = arith.constant 0 : i32
    return %c0_i32, %c0_i32_0 : i32, i32
  }
  func.func @transform_2(%arg0: i32) -> (i32, i32) {
    %c0_i32 = arith.constant 0 : i32
    %c0_i32_0 = arith.constant 0 : i32
    %c0_i32_1 = arith.constant 0 : i32
    return %c0_i32, %c0_i32_0 : i32, i32
  }
  func.func @transform_3(%arg0: i32) -> (i32, i32) {
    %c0_i32 = arith.constant 0 : i32
    %c0_i32_0 = arith.constant 0 : i32
    %c0_i32_1 = arith.constant 0 : i32
    return %c0_i32, %c0_i32_0 : i32, i32
  }
  func.func @transform_4(%arg0: i32) -> (i32, i32) {
    %c0_i32 = arith.constant 0 : i32
    %c0_i32_0 = arith.constant 0 : i32
    %c0_i32_1 = arith.constant 0 : i32
    return %c0_i32, %c0_i32_0 : i32, i32
  }
  func.func @transform_5(%arg0: i32) -> (i32, i32) {
    %c0_i32 = arith.constant 0 : i32
    %c0_i32_0 = arith.constant 0 : i32
    return %arg0, %c0_i32 : i32, i32
  }
}

</mosaic_0001>

<bundles_post_ra>
// kernel: tpu_custom_call.1
= control target key start
LH: loop header
LB: loop body
LE: loop exit
PB: predicated region body
PF: predicated region fallthrough
CT: control target
= control target key end

     0   :  { %10 = vsyncpa [#allocation3], 0  ;;  %s1544_s0 = inlined_call_operand.hbm [shape: bf16[8,1024], index: 0, kind: input, shape index: {}]   ;;  %s1545_s1 = inlined_call_operand.hbm [shape: bf16[1024,128], index: 1, kind: input, shape index: {}]   ;;  %s1546_s2 = inlined_call_operand.hbm [shape: bf16[128,128], index: 2, kind: input, shape index: {}]   ;;  %s1547_s3 = inlined_call_operand.hbm [shape: bf16[128,128], index: 3, kind: input, shape index: {}]   ;;  %s1548_s4 = inlined_call_operand.vmem [shape: f32[2,128], index: 4, kind: input, shape index: {}]   ;;  %s1549_s5 = inlined_call_operand.hbm [shape: f32[8,128], index: 5, kind: output, shape index: {}]  }
   0x1   :  { %11 = vsyncpa [#allocation6], 0 }
   0x2   :  { %12 = vsyncpa [#allocation9], 0 }
   0x3   :  { %13 = vsyncpa [#allocation4], 0  ;;  %s1460_s18 = smov [#allocation5]  }
   0x4   :  { %s29_s19 = sshll.u32 %s1460_s18, 4  ;;  %s30_s19 = int_to_ptr.vmem [resolvable:$true] %s29_s19 }
   0x5   :  { %s1360_s20 = scalar_lea.vmem %s30_s19, 8192  ;;  %p1365_p1 = scmp.lt.s32.totalorder %s30_s19, %s30_s19 }
   0x6   :  { %p1361_p0 = scmp.ne.s32.totalorder %s30_s19, %s1360_s20  ;;  %p1366_p2 = scmp.lt.s32.totalorder %s1360_s20, %s1360_s20 }
   0x8   :  { %p1367_p3 = por %p1366_p2, %p1365_p1 }
   0xa   :  { %p1368_p4 = pnand %p1367_p3, %p1361_p0 }
   0xc   :  { %1371 = shalt.err (!%p1368_p4)
}
   0xd   :  { %s1461_s21 = smov 64   ;;  %s1462_s22 = smov 4  }
   0xe   :  { %35 = dma.hbm_to_vmem [thread:$0]  %s1545_s1, 8192, %s30_s19, [#allocation6], %s1461_s21, %s1461_s21, %s1462_s22  }
   0xf   :  { %s1463_s25 = smov [#allocation2]   ;;  %s1464_s27 = smov [#allocation7]  }
  0x10   :  { %s20_s26 = sshll.u32 %s1463_s25, 4  ;;  %s41_s28 = sshll.u32 %s1464_s27, 4  ;;  %s21_s26 = int_to_ptr.vmem [resolvable:$true] %s20_s26  ;;  %s42_s28 = int_to_ptr.vmem [resolvable:$true] %s41_s28 }
  0x11   :  { %s1380_s29 = scalar_lea.vmem %s21_s26, 512  ;;  %p1385_p6 = scmp.lt.s32.totalorder %s21_s26, %s21_s26 }
  0x12   :  { %p1381_p5 = scmp.ne.s32.totalorder %s21_s26, %s1380_s29  ;;  %p1386_p7 = scmp.lt.s32.totalorder %s1380_s29, %s1380_s29 }
  0x14   :  { %p1387_p8 = por %p1386_p7, %p1385_p6 }
  0x16   :  { %p1388_p9 = pnand %p1387_p8, %p1381_p5 }
  0x18   :  { %1391 = shalt.err (!%p1388_p9)
}
  0x19   :  { %23 = dma.hbm_to_vmem [thread:$0]  %s1544_s0, 512, %s21_s26, [#allocation3]  }
  0x1a   :  { %s1400_s7 = scalar_lea.vmem %s42_s28, 1024  ;;  %p1405_p11 = scmp.lt.s32.totalorder %s42_s28, %s42_s28 }
  0x1b   :  { %p1401_p10 = scmp.ne.s32.totalorder %s42_s28, %s1400_s7  ;;  %p1406_p12 = scmp.lt.s32.totalorder %s1400_s7, %s1400_s7 }
  0x1d   :  { %p1407_p13 = por %p1406_p12, %p1405_p11 }
  0x1f   :  { %p1408_p0 = pnand %p1407_p13, %p1401_p10 }
  0x21   :  { %1411 = shalt.err (!%p1408_p0)
}
  0x22   :  { %47 = dma.hbm_to_vmem [thread:$0]  %s1546_s2, 1024, %s42_s28, [#allocation6], %s1461_s21, %s1461_s21, %s1462_s22  }
  0x23   :  { %s1465_s9 = smov [#allocation8]  }
  0x24   :  { %s53_s10 = sshll.u32 %s1465_s9, 4  ;;  %s54_s10 = int_to_ptr.vmem [resolvable:$true] %s53_s10 }
  0x25   :  { %s1420_s11 = scalar_lea.vmem %s54_s10, 1024  ;;  %p1425_p2 = scmp.lt.s32.totalorder %s54_s10, %s54_s10 }
  0x26   :  { %p1421_p1 = scmp.ne.s32.totalorder %s54_s10, %s1420_s11  ;;  %p1426_p3 = scmp.lt.s32.totalorder %s1420_s11, %s1420_s11 }
  0x28   :  { %p1427_p4 = por %p1426_p3, %p1425_p2 }
  0x2a   :  { %p1428_p5 = pnand %p1427_p4, %p1421_p1 }
  0x2c   :  { %1431 = shalt.err (!%p1428_p5)
}
  0x2d   :  { %59 = dma.hbm_to_vmem [thread:$0]  %s1547_s3, 1024, %s54_s10, [#allocation9], %s1461_s21, %s1461_s21, %s1462_s22  }
  0x2e   :  { %1452 = dma.done.wait [#allocation3], 512  }
  0x2f   :  { %1453 = vsyncadd [#allocation3], 4294966784 }
  0x30   :  { %1454 = dma.done.wait [#allocation6], 9216  }
  0x31   :  { %1455 = vsyncadd [#allocation6], 4294958080 }
  0x32   :  { %1456 = dma.done.wait [#allocation9], 1024  }
  0x33   :  { %1457 = vsyncadd [#allocation9], 4294966272  ;;  %v1264_v0 = vld [vmem:[#allocation5 + $0x78] sm:$0xff]   ;;  %v1268_v4 = vld [vmem:[#allocation5 + $0x70] sm:$0xff]   ;;  %vm1467_vm0 = vmmov 0   ;;  %s1468_s13 = smov [#allocation10]  }
  0x34   :  { %v1265_v1 = vld [vmem:[#allocation5 + $0xf8] sm:$0xff]   ;;  %1109 = vmatprep.subr.bf16.mxu0 %v1264_v0  ;;  %v1269_v5 = vld [vmem:[#allocation5 + $0xf0] sm:$0xff]   ;;  %v1272_v8 = vld [vmem:[#allocation5 + $0x68] sm:$0xff]   ;;  %s1010_s14 = sshll.u32 %s1468_s13, 4  ;;  %s1011_s14 = int_to_ptr.vmem [resolvable:$true] %s1010_s14 }
  0x35   :  { %v1266_v2 = vld [vmem:[#allocation5 + $0x38] sm:$0xff]   ;;  %1131 = vmatprep.subr.bf16.mxu1 %v1265_v1  ;;  %v1270_v6 = vld [vmem:[#allocation5 + $0x30] sm:$0xff]   ;;  %v1273_v9 = vld [vmem:[#allocation5 + $0xe8] sm:$0xff]   ;;  %p1437_p7 = scmp.lt.s32.totalorder %s1011_s14, %s1011_s14 }
  0x36   :  { %v1267_v3 = vld [vmem:[#allocation5 + $0xb8] sm:$0xff]   ;;  %1110 = vmatpush3.bf16.msra.mxu0 %v1266_v2  ;;  %v1271_v7 = vld [vmem:[#allocation5 + $0xb0] sm:$0xff]   ;;  %v1274_v10 = vld [vmem:[#allocation5 + $0x28] sm:$0xff]  }
  0x37   :  { %1132 = vmatpush3.bf16.msra.mxu1 %v1267_v3  ;;  %1111 = vmatprep.subr.bf16.mxu0 %v1268_v4  ;;  %v1275_v11 = vld [vmem:[#allocation5 + $0xa8] sm:$0xff]   ;;  %v1276_v12 = vld [vmem:[#allocation5 + $0x60] sm:$0xff]   ;;  %v1280_v16 = vld [vmem:[#allocation5 + $0x58] sm:$0xff]  }
  0x38   :  { %1133 = vmatprep.subr.bf16.mxu1 %v1269_v5  ;;  %v1277_v13 = vld [vmem:[#allocation5 + $0xe0] sm:$0xff]   ;;  %v1281_v17 = vld [vmem:[#allocation5 + $0xd8] sm:$0xff]   ;;  %v1284_v20 = vld [vmem:[#allocation5 + $0x50] sm:$0xff]  }
  0x39   :  { %v1278_v14 = vld [vmem:[#allocation5 + $0x20] sm:$0xff]   ;;  %v1282_v18 = vld [vmem:[#allocation5 + $0x18] sm:$0xff]   ;;  %v1285_v21 = vld [vmem:[#allocation5 + $0xd0] sm:$0xff]  }
  0x3a   :  { %1112 = vmatpush3.bf16.msra.mxu0 %v1270_v6  ;;  %v1279_v15 = vld [vmem:[#allocation5 + $0xa0] sm:$0xff]   ;;  %v1283_v19 = vld [vmem:[#allocation5 + $0x98] sm:$0xff]   ;;  %v1286_v22 = vld [vmem:[#allocation5 + $0x10] sm:$0xff]  }
  0x3b   :  { %1134 = vmatpush3.bf16.msra.mxu1 %v1271_v7  ;;  %1113 = vmatprep.subr.bf16.mxu0 %v1272_v8  ;;  %v1287_v23 = vld [vmem:[#allocation5 + $0x90] sm:$0xff]   ;;  %v1288_v24 = vld [vmem:[#allocation5 + $0x48] sm:$0xff]   ;;  %v1292_v28 = vld [vmem:[#allocation5 + $0x40] sm:$0xff]  }
  0x3c   :  { %1135 = vmatprep.subr.bf16.mxu1 %v1273_v9  ;;  %v1289_v25 = vld [vmem:[#allocation5 + $0xc8] sm:$0xff]   ;;  %v1293_v29 = vld [vmem:[#allocation5 + $0xc0] sm:$0xff]   ;;  %v1300_v38 = vld [vmem:[#allocation5 + $0x178] sm:$0xff]  }
  0x3d   :  { %v1290_v26 = vld [vmem:[#allocation5 + $0x8] sm:$0xff]   ;;  %v1294_v30 = vld [vmem:[#allocation5] sm:$0xff]   ;;  %v1301_v39 = vld [vmem:[#allocation5 + $0x1f8] sm:$0xff]  }
  0x3e   :  { %1114 = vmatpush3.bf16.msra.mxu0 %v1274_v10  ;;  %v1291_v27 = vld [vmem:[#allocation5 + $0x88] sm:$0xff]   ;;  %v1295_v31 = vld [vmem:[#allocation5 + $0x80] sm:$0xff]   ;;  %v1302_v40 = vld [vmem:[#allocation5 + $0x138] sm:$0xff]  }
  0x3f   :  { %1136 = vmatpush3.bf16.msra.mxu1 %v1275_v11  ;;  %1115 = vmatprep.subr.bf16.mxu0 %v1276_v12  ;;  %v75_v32 = vld [vmem:[#allocation2] sm:$0xff]  ;;  %v76_v33 = vld [vmem:[#allocation2 + $0x8] sm:$0xff]  ;;  %v1303_v41 = vld [vmem:[#allocation5 + $0x1b8] sm:$0xff]  }
  0x40   :  { %1137 = vmatprep.subr.bf16.mxu1 %v1277_v13  ;;  %v1021_v34 = vcombine.low %v75_v32, %v75_v32  ;;  %v1022_v35 = vcombine.high %v75_v32, %v75_v32  ;;  %v1023_v36 = vcombine.low %v76_v33, %v76_v33  ;;  %v1024_v37 = vcombine.high %v76_v33, %v76_v33  ;;  %v1304_v42 = vld [vmem:[#allocation5 + $0x170] sm:$0xff]   ;;  %v1308_v46 = vld [vmem:[#allocation5 + $0x168] sm:$0xff]   ;;  %v1312_v50 = vld [vmem:[#allocation5 + $0x160] sm:$0xff]  }
  0x41   :  { %v1305_v43 = vld [vmem:[#allocation5 + $0x1f0] sm:$0xff]   ;;  %v1309_v47 = vld [vmem:[#allocation5 + $0x1e8] sm:$0xff]   ;;  %v1313_v51 = vld [vmem:[#allocation5 + $0x1e0] sm:$0xff]   ;;  %v1466_v13 = vmov 0.0  }
  0x42   :  { %1116 = vmatpush3.bf16.msra.mxu0 %v1278_v14  ;;  %651 = vmatprep.mubr.bf16.mxu0 %v1022_v35  ;;  %v1306_v44 = vld [vmem:[#allocation5 + $0x130] sm:$0xff]   ;;  %v1310_v48 = vld [vmem:[#allocation5 + $0x128] sm:$0xff]   ;;  %v1314_v52 = vld [vmem:[#allocation5 + $0x120] sm:$0xff]  }
  0x43   :  { %1138 = vmatpush3.bf16.msra.mxu1 %v1279_v15  ;;  %1117 = vmatprep.subr.bf16.mxu0 %v1280_v16  ;;  %v1307_v45 = vld [vmem:[#allocation5 + $0x1b0] sm:$0xff]   ;;  %v1311_v49 = vld [vmem:[#allocation5 + $0x1a8] sm:$0xff]   ;;  %v1315_v53 = vld [vmem:[#allocation5 + $0x1a0] sm:$0xff]  }
  0x44   :  { %1139 = vmatprep.subr.bf16.mxu1 %v1281_v17  ;;  %691 = vmatprep.mubr.bf16.mxu1 %v1024_v37  ;;  %v1316_v54 = vld [vmem:[#allocation5 + $0x158] sm:$0xff]   ;;  %v1320_v58 = vld [vmem:[#allocation5 + $0x150] sm:$0xff]   ;;  %v1324_v62 = vld [vmem:[#allocation5 + $0x148] sm:$0xff]  }
  0x45   :  { %v1317_v55 = vld [vmem:[#allocation5 + $0x1d8] sm:$0xff]   ;;  %v1321_v59 = vld [vmem:[#allocation5 + $0x1d0] sm:$0xff]   ;;  %v1325_v63 = vld [vmem:[#allocation5 + $0x1c8] sm:$0xff]  }
  0x46   :  { %1118 = vmatpush3.bf16.msra.mxu0 %v1282_v18  ;;  %v1318_v56 = vld [vmem:[#allocation5 + $0x118] sm:$0xff]   ;;  %v1322_v60 = vld [vmem:[#allocation5 + $0x110] sm:$0xff]   ;;  %v1326_v0 = vld [vmem:[#allocation5 + $0x108] sm:$0xff]  }
  0x47   :  { %1140 = vmatpush3.bf16.msra.mxu1 %v1283_v19  ;;  %1119 = vmatprep.subr.bf16.mxu0 %v1284_v20  ;;  %v1319_v57 = vld [vmem:[#allocation5 + $0x198] sm:$0xff]   ;;  %v1323_v61 = vld [vmem:[#allocation5 + $0x190] sm:$0xff]   ;;  %v1327_v1 = vld [vmem:[#allocation5 + $0x188] sm:$0xff]  }
  0x48   :  { %1141 = vmatprep.subr.bf16.mxu1 %v1285_v21  ;;  %v1328_v2 = vld [vmem:[#allocation5 + $0x140] sm:$0xff]   ;;  %v77_v6 = vld [vmem:[#allocation2 + $0x10] sm:$0xff]  ;;  %v78_v9 = vld [vmem:[#allocation2 + $0x18] sm:$0xff] }
  0x49   :  { %v1329_v3 = vld [vmem:[#allocation5 + $0x1c0] sm:$0xff]   ;;  %v1025_v7 = vcombine.low %v77_v6, %v77_v6  ;;  %v1026_v8 = vcombine.high %v77_v6, %v77_v6  ;;  %v1027_v10 = vcombine.low %v78_v9, %v78_v9  ;;  %v1028_v11 = vcombine.high %v78_v9, %v78_v9  ;;  %v1336_v12 = vld [vmem:[#allocation7 + $0x38] sm:$0xff]   ;;  %v1337_v14 = vld [vmem:[#allocation7 + $0x30] sm:$0xff]  }
  0x4a   :  { %1120 = vmatpush3.bf16.msra.mxu0 %v1286_v22  ;;  %v1330_v4 = vld [vmem:[#allocation5 + $0x100] sm:$0xff]   ;;  %v1338_v15 = vld [vmem:[#allocation7 + $0x28] sm:$0xff]   ;;  %v1340_v17 = vld [vmem:[#allocation7 + $0x18] sm:$0xff]  }
  0x4b   :  { %1142 = vmatpush3.bf16.msra.mxu1 %v1287_v23  ;;  %1121 = vmatprep.subr.bf16.mxu0 %v1288_v24  ;;  %v1331_v5 = vld [vmem:[#allocation5 + $0x180] sm:$0xff]   ;;  %v1341_v18 = vld [vmem:[#allocation7 + $0x10] sm:$0xff]   ;;  %v1342_v19 = vld [vmem:[#allocation7 + $0x8] sm:$0xff]  }
  0x4c   :  { %1143 = vmatprep.subr.bf16.mxu1 %v1289_v25  ;;  %v1339_v16 = vld [vmem:[#allocation7 + $0x20] sm:$0xff]   ;;  %v1344_v21 = vld [vmem:[#allocation8 + $0x38] sm:$0xff]   ;;  %v1345_v22 = vld [vmem:[#allocation8 + $0x30] sm:$0xff]  }
  0x4d   :  { %v1343_v20 = vld [vmem:[#allocation7] sm:$0xff]   ;;  %v1346_v23 = vld [vmem:[#allocation8 + $0x28] sm:$0xff]   ;;  %v1348_v25 = vld [vmem:[#allocation8 + $0x18] sm:$0xff]  }
  0x4e   :  { %1122 = vmatpush3.bf16.msra.mxu0 %v1290_v26  ;;  %v1347_v24 = vld [vmem:[#allocation8 + $0x20] sm:$0xff]   ;;  %v1349_v26 = vld [vmem:[#allocation8 + $0x10] sm:$0xff]  }
  0x4f   :  { %1144 = vmatpush3.bf16.msra.mxu1 %v1291_v27  ;;  %1123 = vmatprep.subr.bf16.mxu0 %v1292_v28 }
  0x50   :  { %1145 = vmatprep.subr.bf16.mxu1 %v1293_v29 }
  0x52   :  { %1124 = vmatpush3.bf16.msra.mxu0 %v1294_v30 }
  0x53   :  { %1146 = vmatpush3.bf16.msra.mxu1 %v1295_v31  ;;  %1153 = vmatprep.subr.bf16.mxu0 %v1300_v38 }
  0x54   :  { %1175 = vmatprep.subr.bf16.mxu1 %v1301_v39 }
  0x55   :  { %652 = vmatmul.mubr.bf16.vlgmr.msra.gmra.mxu0 %v1021_v34 }
  0x56   :  { %692 = vmatmul.mubr.bf16.vlgmr.msra.gmra.mxu1 %v1023_v36  ;;  %1154 = vmatpush3.bf16.msra.mxu0 %v1302_v40 }
  0x57   :  { %1176 = vmatpush3.bf16.msra.mxu1 %v1303_v41  ;;  %1155 = vmatprep.subr.bf16.mxu0 %v1304_v42 }
  0x58   :  { %1177 = vmatprep.subr.bf16.mxu1 %v1305_v43  ;;  %731 = vmatprep.mubr.bf16.mxu0 %v1026_v8 }
  0x59   :  { %771 = vmatprep.mubr.bf16.mxu1 %v1028_v11 }
  0x5a   :  { %1156 = vmatpush3.bf16.msra.mxu0 %v1306_v44 }
  0x5b   :  { %1178 = vmatpush3.bf16.msra.mxu1 %v1307_v45  ;;  %1157 = vmatprep.subr.bf16.mxu0 %v1308_v46 }
  0x5c   :  { %1179 = vmatprep.subr.bf16.mxu1 %v1309_v47 }
  0x5e   :  { %1158 = vmatpush3.bf16.msra.mxu0 %v1310_v48 }
  0x5f   :  { %1180 = vmatpush3.bf16.msra.mxu1 %v1311_v49  ;;  %1159 = vmatprep.subr.bf16.mxu0 %v1312_v50 }
  0x60   :  { %1181 = vmatprep.subr.bf16.mxu1 %v1313_v51  ;;  %v1350_v51 = vld [vmem:[#allocation8 + $0x8] sm:$0xff]  }
  0x62   :  { %1160 = vmatpush3.bf16.msra.mxu0 %v1314_v52  ;;  %v885_v52 = vlaneseq }
  0x63   :  { %1182 = vmatpush3.bf16.msra.mxu1 %v1315_v53  ;;  %1161 = vmatprep.subr.bf16.mxu0 %v1316_v54  ;;  %v1351_v53 = vld [vmem:[#allocation8] sm:$0xff]  }
  0x64   :  { %1183 = vmatprep.subr.bf16.mxu1 %v1317_v55  ;;  %v886_v54 = vshrl.u32 %v885_v52, 7 }
  0x66   :  { %1162 = vmatpush3.bf16.msra.mxu0 %v1318_v56  ;;  %v913_v55 = vsub.s32 1, %v886_v54  ;;  %v884_v56 = vld [vmem:[%s1548_s4] sm:$0x3]  ;;  %s1432_s4 = scalar_lea.vmem %s1011_s14, 128 }
  0x67   :  { %1184 = vmatpush3.bf16.msra.mxu1 %v1319_v57  ;;  %1163 = vmatprep.subr.bf16.mxu0 %v1320_v58  ;;  %v887_v58 = vsub.s32 0, %v886_v54  ;;  %p1433_p6 = scmp.ne.s32.totalorder %s1011_s14, %s1432_s4  ;;  %p1438_p8 = scmp.lt.s32.totalorder %s1432_s4, %s1432_s4 }
  0x68   :  { %1185 = vmatprep.subr.bf16.mxu1 %v1321_v59  ;;  %v914_v57 = vrot.slane %v884_v56, %v913_v55 }
  0x69   :  { %v888_v59 = vrot.slane %v884_v56, %v887_v58  ;;  %p1439_p9 = por %p1438_p8, %p1437_p7 }
  0x6a   :  { %1164 = vmatpush3.bf16.msra.mxu0 %v1322_v60 }
  0x6b   :  { %1186 = vmatpush3.bf16.msra.mxu1 %v1323_v61  ;;  %1165 = vmatprep.subr.bf16.mxu0 %v1324_v62  ;;  %p1440_p10 = pnand %p1439_p9, %p1433_p6 }
  0x6c   :  { %1187 = vmatprep.subr.bf16.mxu1 %v1325_v63 }
  0x6e   :  { %1166 = vmatpush3.bf16.msra.mxu0 %v1326_v0 }
  0x6f   :  { %1188 = vmatpush3.bf16.msra.mxu1 %v1327_v1  ;;  %1167 = vmatprep.subr.bf16.mxu0 %v1328_v2 }
  0x70   :  { %1189 = vmatprep.subr.bf16.mxu1 %v1329_v3 }
  0x72   :  { %1168 = vmatpush3.bf16.msra.mxu0 %v1330_v4 }
  0x73   :  { %1190 = vmatpush3.bf16.msra.mxu1 %v1331_v5  ;;  %1215 = vmatprep.subr.bf16.mxu0 %v1466_v13 }
  0x74   :  { %1235 = vmatprep.subr.bf16.mxu1 %v1466_v13 }
  0x75   :  { %732 = vmatmul.mubr.bf16.vlgmr.msra.gmra.mxu0 %v1025_v7 }
  0x76   :  { %772 = vmatmul.mubr.bf16.vlgmr.msra.gmra.mxu1 %v1027_v10  ;;  %1216 = vmatpush3.bf16.msra.mxu0 %v1336_v12 }
  0x77   :  { %1217 = vmatprep.subr.bf16.mxu0 %v1466_v13  ;;  %1231 = vmatprep.mubr.msk.bf16.mxu0 %vm1467_vm0, %v1466_v13 }
  0x78   :  { %1251 = vmatprep.mubr.msk.bf16.mxu1 %vm1467_vm0, %v1466_v13  ;;  %1236 = vmatpush3.bf16.msra.mxu1 %v1344_v21 }
  0x79   :  { %1237 = vmatprep.subr.bf16.mxu1 %v1466_v13 }
  0x7a   :  { %1218 = vmatpush3.bf16.msra.mxu0 %v1337_v14 }
  0x7b   :  { %1219 = vmatprep.subr.bf16.mxu0 %v1466_v13 }
  0x7c   :  { %1238 = vmatpush3.bf16.msra.mxu1 %v1345_v22 }
  0x7d   :  { %1239 = vmatprep.subr.bf16.mxu1 %v1466_v13 }
  0x7e   :  { %1220 = vmatpush3.bf16.msra.mxu0 %v1338_v15 }
  0x7f   :  { %1221 = vmatprep.subr.bf16.mxu0 %v1466_v13 }
  0x80   :  { %1240 = vmatpush3.bf16.msra.mxu1 %v1346_v23 }
  0x81   :  { %1241 = vmatprep.subr.bf16.mxu1 %v1466_v13 }
  0x82   :  { %1222 = vmatpush3.bf16.msra.mxu0 %v1339_v16 }
  0x83   :  { %1223 = vmatprep.subr.bf16.mxu0 %v1466_v13 }
  0x84   :  { %1242 = vmatpush3.bf16.msra.mxu1 %v1347_v24 }
  0x85   :  { %1243 = vmatprep.subr.bf16.mxu1 %v1466_v13 }
  0x86   :  { %1224 = vmatpush3.bf16.msra.mxu0 %v1340_v17 }
  0x87   :  { %1225 = vmatprep.subr.bf16.mxu0 %v1466_v13 }
  0x88   :  { %1244 = vmatpush3.bf16.msra.mxu1 %v1348_v25 }
  0x89   :  { %1245 = vmatprep.subr.bf16.mxu1 %v1466_v13 }
  0x8a   :  { %1226 = vmatpush3.bf16.msra.mxu0 %v1341_v18 }
  0x8b   :  { %1227 = vmatprep.subr.bf16.mxu0 %v1466_v13 }
  0x8c   :  { %1246 = vmatpush3.bf16.msra.mxu1 %v1349_v26 }
  0x8d   :  { %1247 = vmatprep.subr.bf16.mxu1 %v1466_v13 }
  0x8e   :  { %1228 = vmatpush3.bf16.msra.mxu0 %v1342_v19 }
  0x8f   :  { %1229 = vmatprep.subr.bf16.mxu0 %v1466_v13 }
  0x90   :  { %1248 = vmatpush3.bf16.msra.mxu1 %v1350_v51 }
  0x91   :  { %1249 = vmatprep.subr.bf16.mxu1 %v1466_v13 }
  0x92   :  { %1230 = vmatpush3.bf16.msra.mxu0 %v1343_v20 }
  0x94   :  { %1250 = vmatpush3.bf16.msra.mxu1 %v1351_v53 }
 0x115   :  { %v1125_v27 = vpop.f32.mrf.mxu0 }
 0x116   :  { %v1147_v28 = vpop.f32.mrf.mxu1 }
 0x117   :  { %v1126_v29 = vpop.f32.mrf.mxu0 }
 0x118   :  { %v1148_v30 = vpop.f32.mrf.mxu1  ;;  %v1127_v35 = vadd.f32 %v1126_v29, %v1125_v27 }
 0x119   :  { %v1128_v31 = vpop.f32.mrf.mxu0  ;;  %v1149_v36 = vadd.f32 %v1148_v30, %v1147_v28 }
 0x11a   :  { %v1150_v32 = vpop.f32.mrf.mxu1 }
 0x11b   :  { %v1129_v33 = vpop.f32.mrf.mxu0  ;;  %v694_v41 = vadd.f32 %v1149_v36, %v1127_v35 }
 0x11c   :  { %v1151_v34 = vpop.f32.mrf.mxu1 }
 0x135   :  { %v1169_v37 = vpop.f32.mrf.mxu0 }
 0x136   :  { %v1191_v38 = vpop.f32.mrf.mxu1 }
 0x137   :  { %v1170_v39 = vpop.f32.mrf.mxu0 }
 0x138   :  { %v1192_v40 = vpop.f32.mrf.mxu1  ;;  %v1171_v42 = vadd.f32 %v1170_v39, %v1169_v37 }
 0x139   :  { %v1172_v43 = vpop.f32.mrf.mxu0  ;;  %v1193_v46 = vadd.f32 %v1192_v40, %v1191_v38 }
 0x13a   :  { %v1194_v44 = vpop.f32.mrf.mxu1  ;;  %v734_v45 = vadd.f32 %v1171_v42, %v694_v41 }
 0x13b   :  { %v1173_v47 = vpop.f32.mrf.mxu0 }
 0x13c   :  { %v1195_v48 = vpop.f32.mrf.mxu1  ;;  %v774_v49 = vadd.f32 %v1193_v46, %v734_v45 }
 0x13e   :  { %v779_v50 = vpack.c.bf16 %v774_v49, %v774_v49 }
 0x140   :  { %1232 = vmatmul.mubr.bf16.vlgmr.msra.gmra.mxu0 %v779_v50 }
 0x200   :  { %v878_v60 = vpop.f32.mrf.mxu0 }
 0x201   :  { %v889_v61 = vadd.f32 %v888_v59, %v878_v60  ;;  %v891_v62 = vsub.f32 %v888_v59, %v878_v60 }
 0x202   :  { %v1233_v63 = vpop.f32.mrf.mxu0 }
 0x203   :  { %v890_v0 = vmax.f32 %v889_v61, 0.0  ;;  %v892_v1 = vmax.f32 %v891_v62, 0.0 }
 0x204   :  { %v881_v2 = vpop.f32.mrf.mxu0 }
 0x205   :  { %v893_v3 = vadd.f32 %v892_v1, %v890_v0 }
 0x206   :  { %v1234_v4 = vpop.f32.mrf.mxu0 }
 0x207   :  { %v894_v5 = vpack.c.bf16 %v893_v3, %v893_v3 }
 0x209   :  { %1252 = vmatmul.mubr.bf16.vlgmr.msra.gmra.mxu1 %v894_v5 }
 0x2c9   :  { %v997_v6 = vpop.f32.mrf.mxu1 }
 0x2ca   :  { %v998_v7 = vadd.f32 %v997_v6, %v914_v57 }
 0x2cb   :  { %v1253_v8 = vpop.f32.mrf.mxu1 }
 0x2cc   :  { %1003 = vst [vmem:[#allocation10] sm:$0xff] %v998_v7 }
 0x2cd   :  { %v1000_v9 = vpop.f32.mrf.mxu1 }
 0x2ce   :  { %1443 = shalt.err (!%p1440_p10)
}
 0x2cf   :  { %1013 = dma.vmem_to_hbm [thread:$0]  %s1011_s14, 128, %s1549_s5, [#allocation4]   ;;  %v1254_v10 = vpop.f32.mrf.mxu1 }
 0x2d0   :  { %1458 = dma.done.wait [#allocation4], 128  }
 0x2d1   :  { %1459 = vsyncadd [#allocation4], 4294967168 }
 0x2d2   :  { %1017 = vsyncpa [#allocation3], 1 }
 0x2d3   :  { %1018 = vsyncpa [#allocation6], 1 }
 0x2d4   :  { %1019 = vsyncpa [#allocation9], 1 }
 0x2d5   :  { %1020 = vsyncpa [#allocation4], 1 }

</bundles_post_ra>
